<compile_context>
chip_gen: v6e
topology: v6e:2x2x1
jax: 0.10.0
libtpu: 0.0.40
codegen_flags: <defaults>
</compile_context>

<pallas_src>
import jax
import jax.numpy as jnp
from jax.experimental import pallas as pl
from jax.experimental.pallas import tpu as pltpu


def _add_pe_kernel(x_ref, pe_ref, o_ref):
    # x_ref / o_ref: (tb, R, C) in the batch-blocked path, or (tr, C) in the
    # tiled path (batch dim squeezed).  pe_ref: (R, C) / (tr, C); broadcasts
    # over the leading batch dim when present.
    o_ref[...] = x_ref[...] + pe_ref[...].astype(x_ref.dtype)


def _pick_tile_cap_and_vmem_limit():
    """Generation-aware per-tile byte cap (and scoped-VMEM raise for v7x)."""
    kind = ""
    try:
        kind = jax.devices()[0].device_kind.lower()
    except Exception:
        pass
    if "v7" in kind or "7x" in kind:
        # ~3.2 TB/s HBM: need large tiles to amortize per-step overhead.
        # 6 buffers x 6 MiB = 36 MiB -> raise the scoped limit (64 MiB phys).
        return 6 << 20, 48 << 20
    if "v6" in kind:
        return 4 << 20, None   # 6 x 4 MiB = 24 MiB < 32 MiB scoped default
    if "v5" in kind:
        return 2 << 20, None   # 6 x 2 MiB = 12 MiB < 16 MiB scoped default
    return 2 << 20, None       # unknown: conservative, fits everywhere


def learnable_pos_embedding(x: jnp.ndarray, pos_embedding: jnp.ndarray) -> jnp.ndarray:
    """x: [B, S, D]; pos_embedding: [1, max_len, D]. Returns x + pos_embedding[:, :S, :]."""
    B, S, D = x.shape
    pe = pos_embedding[0, :S, :]          # (S, D); cast happens inside the kernel

    # --- lane-dense layout for the (seq, feature) plane ---------------------
    if D % 128 == 0:
        R, C = S, D
        x3, pe2 = x, pe
    elif D < 128 and (S * D) % 128 == 0:
        # Narrow feature dim: fold so stores are full-lane unmasked vst.
        C = 128
        R = (S * D) // C
        x3 = x.reshape(B, R, C)
        pe2 = pe.reshape(R, C)
    else:
        # Natural layout; a fold/pad here would force an XLA relayout that
        # costs more HBM traffic than the masked stores it removes.
        # TODO(synk): pad D to a multiple of 128 when masked stores dominate.
        R, C = S, D
        x3, pe2 = x, pe

    cap_bytes, vmem_limit = _pick_tile_cap_and_vmem_limit()
    itemsize = jnp.dtype(x.dtype).itemsize

    # --- row tiling: cap bytes per buffered tile, rows a multiple of 8 ------
    max_rows = max(8, cap_bytes // max(1, C * itemsize))
    if R <= max_rows:
        tr = R                              # full extent (no (8,128) constraint)
    else:
        tr = (max_rows // 8) * 8            # multiple of 8
    grid_r = pl.cdiv(R, tr)

    def _params(sem):
        return pltpu.CompilerParams(
            dimension_semantics=sem, vmem_limit_bytes=vmem_limit)

    if grid_r == 1:
        # Whole (R, C) plane fits in one tile: block several batch elements
        # per grid step to amortize per-step overhead; PE stays one (R, C)
        # block and broadcasts over the batch dim.
        plane_bytes = R * C * itemsize
        tb = int(max(1, min(B, cap_bytes // max(1, plane_bytes))))
        out = pl.pallas_call(
            _add_pe_kernel,
            out_shape=jax.ShapeDtypeStruct((B, R, C), x.dtype),
            grid_spec=pltpu.PrefetchScalarGridSpec(
                num_scalar_prefetch=0,
                grid=(pl.cdiv(B, tb),),
                in_specs=[
                    pl.BlockSpec((tb, R, C), lambda b: (b, 0, 0)),
                    pl.BlockSpec((R, C), lambda b: (0, 0)),
                ],
                out_specs=pl.BlockSpec((tb, R, C), lambda b: (b, 0, 0)),
            ),
            compiler_params=_params(("parallel",)),
        )(x3, pe2)
    else:
        # grid = (seq tiles, batch): batch innermost so the PE block index is
        # unchanged across the inner loop and its DMA is reused; seq-tile
        # axis "parallel" (megacore split on v7x), batch "arbitrary".
        out = pl.pallas_call(
            _add_pe_kernel,
            out_shape=jax.ShapeDtypeStruct((B, R, C), x.dtype),
            grid_spec=pltpu.PrefetchScalarGridSpec(
                num_scalar_prefetch=0,
                grid=(grid_r, B),
                in_specs=[
                    # None on the batch dim -> squeezed: kernel sees (tr, C).
                    pl.BlockSpec((None, tr, C), lambda r, b: (b, r, 0)),
                    pl.BlockSpec((tr, C), lambda r, b: (r, 0)),
                ],
                out_specs=pl.BlockSpec((None, tr, C), lambda r, b: (b, r, 0)),
            ),
            compiler_params=_params(("parallel", "arbitrary")),
        )(x3, pe2)

    return out.reshape(B, S, D)


def _reference(x: jnp.ndarray, pos_embedding: jnp.ndarray) -> jnp.ndarray:
    """Pure-JAX reference mirroring the PyTorch forward (compute in x.dtype)."""
    S = x.shape[1]
    return x + pos_embedding[:, :S, :].astype(x.dtype)


if __name__ == "__main__":
    key = jax.random.PRNGKey(0)
    kx, kp = jax.random.split(key)

    B, S, D = 2, 8, 32          # batch=2, seq_len=8, d_model=32
    MAX_LEN = 16                # max_len >= seq_len
    x = jax.random.normal(kx, (B, S, D), dtype=jnp.float32)
    pos_embedding = jax.random.normal(kp, (1, MAX_LEN, D), dtype=jnp.float32)

    out = learnable_pos_embedding(x, pos_embedding)
    jax.block_until_ready(out)

    ref = _reference(x, pos_embedding)
    assert out.shape == (B, S, D)
    assert jnp.allclose(out, ref, atol=1e-6, rtol=1e-6), "mismatch vs reference"

    print("KERNEL_OK")
</pallas_src>

<mosaic_0001>
module attributes {stable_mosaic.version = 11 : i64} {
  func.func @_add_pe_kernel(%arg0: i32, %arg1: memref<2x2x128xf32, #tpu.memory_space<vmem>>, %arg2: memref<2x128xf32, #tpu.memory_space<vmem>>, %arg3: memref<2x2x128xf32, #tpu.memory_space<vmem>>) attributes {dimension_semantics = [#tpu.dimension_semantics<parallel>], iteration_bounds = array<i64: 1>, scalar_prefetch = 0 : i64, scratch_operands = 0 : i64, tpu.core_type = #tpu.core_type<tc>, window_params = [{transform_indices = @transform_0, window_bounds = array<i64: 2, 2, 128>}, {pipeline_mode = #tpu.pipeline_mode<synchronous>, transform_indices = @transform_1, window_bounds = array<i64: 2, 128>}, {transform_indices = @transform_2, window_bounds = array<i64: 2, 2, 128>}]} {
    %c0 = arith.constant 0 : index
    %c0_0 = arith.constant 0 : index
    %c0_1 = arith.constant 0 : index
    %0 = vector.load %arg1[%c0, %c0_0, %c0_1] : memref<2x2x128xf32, #tpu.memory_space<vmem>>, vector<2x2x128xf32>
    %c0_2 = arith.constant 0 : index
    %c0_3 = arith.constant 0 : index
    %1 = vector.load %arg2[%c0_2, %c0_3] : memref<2x128xf32, #tpu.memory_space<vmem>>, vector<2x128xf32>
    %2 = vector.shape_cast %1 : vector<2x128xf32> to vector<1x2x128xf32>
    %3 = vector.broadcast %2 : vector<1x2x128xf32> to vector<2x2x128xf32>
    %4 = arith.addf %0, %3 : vector<2x2x128xf32>
    %c0_4 = arith.constant 0 : index
    %c0_5 = arith.constant 0 : index
    %c0_6 = arith.constant 0 : index
    %5 = vector.load %arg3[%c0_4, %c0_5, %c0_6] : memref<2x2x128xf32, #tpu.memory_space<vmem>>, vector<2x2x128xf32>
    tpu.vector_store %arg3[%c0_4, %c0_5, %c0_6], %4 {strides = array<i32>} : memref<2x2x128xf32, #tpu.memory_space<vmem>>, vector<2x2x128xf32>,
    return
  }
  func.func @transform_0(%arg0: i32) -> (i32, i32, i32) {
    %c0_i32 = arith.constant 0 : i32
    %c0_i32_0 = arith.constant 0 : i32
    %c0_i32_1 = arith.constant 0 : i32
    return %arg0, %c0_i32, %c0_i32_0 : i32, i32, i32
  }
  func.func @transform_1(%arg0: i32) -> (i32, i32) {
    %c0_i32 = arith.constant 0 : i32
    %c0_i32_0 = arith.constant 0 : i32
    %c0_i32_1 = arith.constant 0 : i32
    return %c0_i32, %c0_i32_0 : i32, i32
  }
  func.func @transform_2(%arg0: i32) -> (i32, i32, i32) {
    %c0_i32 = arith.constant 0 : i32
    %c0_i32_0 = arith.constant 0 : i32
    %c0_i32_1 = arith.constant 0 : i32
    return %arg0, %c0_i32, %c0_i32_0 : i32, i32, i32
  }
}

</mosaic_0001>

<bundles_post_ra>
// kernel: tpu_custom_call.1
= control target key start
LH: loop header
LB: loop body
LE: loop exit
PB: predicated region body
PF: predicated region fallthrough
CT: control target
= control target key end

     0   :  { %7 = vsyncpa [#allocation3], 0  ;;  %s169_s0 = inlined_call_operand.hbm [shape: f32[2,2,128], index: 0, kind: input, shape index: {}]   ;;  %s170_s1 = inlined_call_operand.hbm [shape: f32[2,128], index: 1, kind: input, shape index: {}]   ;;  %s171_s2 = inlined_call_operand.hbm [shape: f32[2,2,128], index: 2, kind: output, shape index: {}]  }
   0x1   :  { %8 = vsyncpa [#allocation6], 0 }
   0x2   :  { %9 = vsyncpa [#allocation4], 0  ;;  %s134_s9 = smov [#allocation2]  }
   0x3   :  { %s15_s10 = sshll.u32 %s134_s9, 4  ;;  %s16_s10 = int_to_ptr.vmem [resolvable:$true] %s15_s10 }
   0x4   :  { %s76_s11 = scalar_lea.vmem %s16_s10, 64  ;;  %p81_p1 = scmp.lt.s32.totalorder %s16_s10, %s16_s10 }
   0x5   :  { %p77_p0 = scmp.ne.s32.totalorder %s16_s10, %s76_s11  ;;  %p82_p2 = scmp.lt.s32.totalorder %s76_s11, %s76_s11 }
   0x7   :  { %p83_p3 = por %p82_p2, %p81_p1 }
   0x9   :  { %p84_p4 = pnand %p83_p3, %p77_p0 }
   0xb   :  { %87 = shalt.err (!%p84_p4)
}
   0xc   :  { %s135_s12 = smov 32   ;;  %s136_s13 = smov 2  }
   0xd   :  { %21 = dma.hbm_to_vmem [thread:$0]  %s169_s0, 64, %s16_s10, [#allocation3], %s135_s12, %s135_s12, %s136_s13  }
   0xe   :  { %s137_s16 = smov [#allocation5]  }
   0xf   :  { %s28_s17 = sshll.u32 %s137_s16, 4  ;;  %s29_s17 = int_to_ptr.vmem [resolvable:$true] %s28_s17 }
  0x10   :  { %s96_s18 = scalar_lea.vmem %s29_s17, 32  ;;  %p101_p6 = scmp.lt.s32.totalorder %s29_s17, %s29_s17 }
  0x11   :  { %p97_p5 = scmp.ne.s32.totalorder %s29_s17, %s96_s18  ;;  %p102_p7 = scmp.lt.s32.totalorder %s96_s18, %s96_s18 }
  0x13   :  { %p103_p8 = por %p102_p7, %p101_p6 }
  0x15   :  { %p104_p9 = pnand %p103_p8, %p97_p5 }
  0x17   :  { %107 = shalt.err (!%p104_p9)
}
  0x18   :  { %31 = dma.hbm_to_vmem [thread:$0]  %s170_s1, 32, %s29_s17, [#allocation6]  }
  0x19   :  { %128 = dma.done.wait [#allocation3], 64  }
  0x1a   :  { %129 = vsyncadd [#allocation3], 4294967232 }
  0x1b   :  { %130 = dma.done.wait [#allocation6], 32  }
  0x1c   :  { %131 = vsyncadd [#allocation6], 4294967264  ;;  %s138_s21 = smov [#allocation7]   ;;  %v38_v0 = vld [vmem:[#allocation2] sm:$0x3] }
  0x1d   :  { %s50_s0 = sshll.u32 %s138_s21, 4  ;;  %v40_v1 = vld [vmem:[#allocation5] sm:$0x3]  ;;  %v39_v2 = vld [vmem:[#allocation2 + $0x2] sm:$0x3]  ;;  %s51_s0 = int_to_ptr.vmem [resolvable:$true] %s50_s0 }
  0x1e   :  { %v41_v3 = vadd.f32 %v40_v1, %v38_v0  ;;  %v42_v4 = vadd.f32 %v40_v1, %v39_v2  ;;  %s108_s22 = scalar_lea.vmem %s51_s0, 64  ;;  %p113_p11 = scmp.lt.s32.totalorder %s51_s0, %s51_s0 }
  0x1f   :  { %p109_p10 = scmp.ne.s32.totalorder %s51_s0, %s108_s22  ;;  %p114_p12 = scmp.lt.s32.totalorder %s108_s22, %s108_s22 }
  0x20   :  { %43 = vst [vmem:[#allocation7] sm:$0x3] %v41_v3  ;;  %44 = vst [vmem:[#allocation7 + $0x2] sm:$0x3] %v42_v4 }
  0x21   :  { %p115_p13 = por %p114_p12, %p113_p11 }
  0x23   :  { %p116_p0 = pnand %p115_p13, %p109_p10 }
  0x25   :  { %119 = shalt.err (!%p116_p0)
}
  0x26   :  { %56 = dma.vmem_to_hbm [thread:$0]  %s51_s0, 64, %s171_s2, [#allocation4], %s135_s12, %s135_s12, %s136_s13  }
  0x27   :  { %132 = dma.done.wait [#allocation4], 64  }
  0x28   :  { %133 = vsyncadd [#allocation4], 4294967232 }
  0x29   :  { %60 = vsyncpa [#allocation3], 1 }
  0x2a   :  { %61 = vsyncpa [#allocation6], 1 }
  0x2b   :  { %62 = vsyncpa [#allocation4], 1 }

</bundles_post_ra>
